<compile_context>
chip_gen: v6e
topology: v6e:2x2x1
jax: 0.10.0
libtpu: 0.0.40
codegen_flags: <defaults>
</compile_context>

<pallas_src>
import functools

import jax
import jax.numpy as jnp
from jax.experimental import pallas as pl
from jax.experimental.pallas import tpu as pltpu


def _initializer_kernel(x_ref, o_ref, *, m, d, inv_m, scale, normalize):
    """Mean over M candidate vectors + optional scaled L2 normalize.

    x_ref: (TN, M*D) VMEM tile (input dtype; arithmetic kept in f32)
    o_ref: (TN, D)   VMEM tile
    The M-way reduction is M-1 lane-aligned slice adds (slice offsets are
    multiples of D = 768 = 6*128, so no relayout): it runs on the VALU with a
    single (TN, D) accumulator instead of a cross-sublane XLU reduce.
    """
    w = x_ref[:, 0:d].astype(jnp.float32)
    for j in range(1, m):
        w = w + x_ref[:, j * d:(j + 1) * d].astype(jnp.float32)
    w = w * inv_m                                             # mean = sum * 1/M
    if normalize:
        # F.normalize(dim=-1, eps=1e-12): w / max(||w||_2, 1e-12).
        sq = jnp.sum(w * w, axis=-1, keepdims=True)           # (TN, 1)
        # rsqrt(max(sq, 1e-24)) == 1 / max(||w||, 1e-12); fold `scale` into the
        # narrow (TN, 1) factor so the only D-wide multiply is the final one.
        inv = jax.lax.rsqrt(jnp.maximum(sq, 1e-24)) * scale   # (TN, 1)
        w = w * inv
    o_ref[...] = w.astype(o_ref.dtype)


def _round_up(x, m):
    return (x + m - 1) // m * m


def _pick_tile_n(n, m, d, in_itemsize, out_itemsize, align):
    """Sublane-aligned TN whose *double-buffered* VMEM footprint stays well
    under every generation's default scoped-VMEM limit (v5e: 16 MiB)."""
    # 2x for the double-buffered input block + 2x for the output block.
    row_bytes = 2 * (m * d * in_itemsize) + 2 * (d * out_itemsize)
    budget = 12 * 1024 * 1024
    tn = max(align, (budget // row_bytes) // align * align)
    # Cap so the grid has >= 4 steps: lets the "parallel" axis shard across
    # both v7x TensorCores and lets the pipeline hide output writeback.
    cap = max(align, _round_up(-(-n // 4), align))
    return int(min(tn, cap))


def initializer_forward(inputs, k_shot, *, out_dtype=jnp.float32, tile_n=None):
    """Pallas equivalent of Initializer.forward.

    inputs: jnp.ndarray of shape (N, M, D)  (N = n_way, M = candidates per
            class, D = 768).  f32 or bf16 (bf16 halves input HBM traffic;
            arithmetic is always done in f32 inside the kernel).
    k_shot: python int (1 or 5 trigger normalization, matching the module).
    out_dtype: output dtype (f32 by default to match torch).
    tile_n: force the tiled-over-N path with this tile size.
    returns: (N, D) array of `out_dtype`.
    """
    N, M, D = inputs.shape
    normalize = k_shot in (1, 5)
    scale = 0.5 if k_shot == 5 else 1.0
    in_itemsize = jnp.dtype(inputs.dtype).itemsize
    out_itemsize = jnp.dtype(out_dtype).itemsize
    # Sublane alignment of the TN axis: 8 rows for 32-bit, 16 for 16-bit input.
    align = 8 * max(1, 4 // in_itemsize)

    kernel = functools.partial(
        _initializer_kernel, m=M, d=D, inv_m=1.0 / M, scale=scale,
        normalize=normalize)

    # Flatten (N, M, D) -> (N, M*D): contiguous (free) and removes the
    # M=5 -> 8 sublane pad from both the HBM tiled layout and the VMEM block.
    x = inputs.reshape(N, M * D)

    in_bytes = N * M * D * in_itemsize
    use_tiled = tile_n is not None or in_bytes > (6 * 1024 * 1024)

    if not use_tiled:
        # Small/medium fast path: no grid, no pipeline prologue/epilogue --
        # whole-array VMEM refs (<= ~6 MiB input fits under the 16 MiB default
        # scoped-VMEM limit on every generation).
        return pl.pallas_call(
            kernel,
            out_shape=jax.ShapeDtypeStruct((N, D), out_dtype),
            in_specs=[pl.BlockSpec(memory_space=pltpu.MemorySpace.VMEM)],
            out_specs=pl.BlockSpec(memory_space=pltpu.MemorySpace.VMEM),
        )(x)

    # Tiled path for large n_way: sublane-aligned TN so the output store is an
    # unmasked full-sublane vst, double-buffered HBM->VMEM DMA overlaps the
    # VALU reduction, and the N axis is "parallel" (sharded across v7x's 2 TCs).
    if tile_n is not None:
        tn = max(align, _round_up(int(tile_n), align))
    else:
        tn = _pick_tile_n(N, M, D, in_itemsize, out_itemsize, align)

    n_pad = _round_up(N, tn)
    if n_pad != N:
        # Zero rows reduce to 0 and 0 * (rsqrt(1e-24) * scale) == 0: safe.
        x = jnp.pad(x, ((0, n_pad - N), (0, 0)))

    # Explicit scoped-VMEM limit sized from the real double-buffered footprint
    # so the auto-picked TN can never trip v5e's 16 MiB default.
    footprint = 2 * tn * (M * D * in_itemsize + D * out_itemsize)
    vmem_limit = int(min(56 * 1024 * 1024,
                         max(footprint + 4 * 1024 * 1024, 16 * 1024 * 1024)))

    out_padded = pl.pallas_call(
        kernel,
        out_shape=jax.ShapeDtypeStruct((n_pad, D), out_dtype),
        grid=(n_pad // tn,),
        in_specs=[pl.BlockSpec((tn, M * D), lambda i: (i, 0))],
        out_specs=pl.BlockSpec((tn, D), lambda i: (i, 0)),
        compiler_params=pltpu.CompilerParams(
            dimension_semantics=("parallel",),
            vmem_limit_bytes=vmem_limit,
        ),
    )(x)
    return out_padded[:N] if n_pad != N else out_padded


def _reference_forward(inputs, k_shot):
    """Pure-JAX reference mirroring the PyTorch code (also the recommended
    implementation at tiny sizes, where pallas_call overhead dominates)."""
    w = jnp.mean(inputs.astype(jnp.float32), axis=1)
    if k_shot in (1, 5):
        norm = jnp.sqrt(jnp.sum(w * w, axis=-1, keepdims=True))
        w_n = w / jnp.maximum(norm, 1e-12)
        w = w_n if k_shot == 1 else 0.5 * w_n
    return w


if __name__ == "__main__":
    # Module-native sizes: n_way N = 4, k_shot K = 5, M = 5 candidate vectors
    # per class, embedding_dim D = 768.
    N, K, D = 4, 5, 768
    M = K

    key = jax.random.PRNGKey(0)
    # Synthetic "candidate word embeddings" per class (stands in for the JSON
    # file the PyTorch module would have loaded).
    inputs = jax.random.normal(key, (N, M, D), dtype=jnp.float32)

    # Small-N gridless path (k_shot=5 -> 0.5 * normalize).
    out = jax.block_until_ready(initializer_forward(inputs, k_shot=K))
    ref = _reference_forward(inputs, K)
    assert out.shape == (N, D)
    assert jnp.allclose(out, ref, atol=1e-5, rtol=1e-5)

    # Tiled large-N path (k_shot=1 -> plain normalize), forcing a small tile so
    # the grid / padding / parallel-axis logic is exercised.
    N2 = 20  # deliberately not a multiple of the tile to exercise padding
    inputs2 = jax.random.normal(jax.random.PRNGKey(1), (N2, M, D), jnp.float32)
    out2 = jax.block_until_ready(initializer_forward(inputs2, k_shot=1, tile_n=8))
    ref2 = _reference_forward(inputs2, 1)
    assert out2.shape == (N2, D)
    assert jnp.allclose(out2, ref2, atol=1e-5, rtol=1e-5)

    # bf16-input variant (halves input HBM traffic; arithmetic stays f32).
    inputs3 = inputs2.astype(jnp.bfloat16)
    out3 = jax.block_until_ready(initializer_forward(inputs3, k_shot=1, tile_n=16))
    ref3 = _reference_forward(inputs3, 1)
    assert out3.shape == (N2, D)
    assert jnp.allclose(out3, ref3, atol=2e-2, rtol=2e-2)

    # No-normalization branch (k_shot not in {1, 5}).
    out4 = jax.block_until_ready(initializer_forward(inputs, k_shot=3))
    assert jnp.allclose(out4, _reference_forward(inputs, 3), atol=1e-5, rtol=1e-5)

    print("KERNEL_OK")
</pallas_src>

<mosaic_0001>
module attributes {stable_mosaic.version = 11 : i64} {
  func.func @_initializer_kernel(%arg0: memref<4x3840xf32, #tpu.memory_space<vmem>>, %arg1: memref<4x768xf32, #tpu.memory_space<vmem>>) attributes {dimension_semantics = [], scalar_prefetch = 0 : i64, scratch_operands = 0 : i64, tpu.core_type = #tpu.core_type<tc>} {
    %c0 = arith.constant 0 : index
    %c0_0 = arith.constant 0 : index
    %0 = vector.load %arg0[%c0, %c0_0] : memref<4x3840xf32, #tpu.memory_space<vmem>>, vector<4x768xf32>
    %c0_1 = arith.constant 0 : index
    %c768 = arith.constant 768 : index
    %1 = vector.load %arg0[%c0_1, %c768] : memref<4x3840xf32, #tpu.memory_space<vmem>>, vector<4x768xf32>
    %2 = arith.addf %0, %1 : vector<4x768xf32>
    %c0_2 = arith.constant 0 : index
    %c1536 = arith.constant 1536 : index
    %3 = vector.load %arg0[%c0_2, %c1536] : memref<4x3840xf32, #tpu.memory_space<vmem>>, vector<4x768xf32>
    %4 = arith.addf %2, %3 : vector<4x768xf32>
    %c0_3 = arith.constant 0 : index
    %c2304 = arith.constant 2304 : index
    %5 = vector.load %arg0[%c0_3, %c2304] : memref<4x3840xf32, #tpu.memory_space<vmem>>, vector<4x768xf32>
    %6 = arith.addf %4, %5 : vector<4x768xf32>
    %c0_4 = arith.constant 0 : index
    %c3072 = arith.constant 3072 : index
    %7 = vector.load %arg0[%c0_4, %c3072] : memref<4x3840xf32, #tpu.memory_space<vmem>>, vector<4x768xf32>
    %8 = arith.addf %6, %7 : vector<4x768xf32>
    %cst = arith.constant 2.000000e-01 : f32
    %9 = vector.broadcast %cst : f32 to vector<4x768xf32>
    %10 = arith.mulf %8, %9 : vector<4x768xf32>
    %11 = arith.mulf %10, %10 : vector<4x768xf32>
    %cst_5 = arith.constant dense<0.000000e+00> : vector<4xf32>
    %12 = vector.multi_reduction <add>, %11, %cst_5 [1] : vector<4x768xf32> to vector<4xf32>
    %13 = vector.shape_cast %12 : vector<4xf32> to vector<4x1xf32>
    %cst_6 = arith.constant 1.000000e-24 : f32
    %14 = vector.broadcast %cst_6 : f32 to vector<4x1xf32>
    %15 = arith.maximumf %13, %14 : vector<4x1xf32>
    %16 = math.rsqrt %15 : vector<4x1xf32>
    %cst_7 = arith.constant 5.000000e-01 : f32
    %17 = vector.broadcast %cst_7 : f32 to vector<4x1xf32>
    %18 = arith.mulf %16, %17 : vector<4x1xf32>
    %19 = vector.broadcast %18 : vector<4x1xf32> to vector<4x768xf32>
    %20 = arith.mulf %10, %19 : vector<4x768xf32>
    %c0_8 = arith.constant 0 : index
    %c0_9 = arith.constant 0 : index
    %21 = vector.load %arg1[%c0_8, %c0_9] : memref<4x768xf32, #tpu.memory_space<vmem>>, vector<4x768xf32>
    tpu.vector_store %arg1[%c0_8, %c0_9], %20 {strides = array<i32>} : memref<4x768xf32, #tpu.memory_space<vmem>>, vector<4x768xf32>,
    return
  }
}

</mosaic_0001>

<bundles_post_ra>
// kernel: tpu_custom_call.1
= control target key start
LH: loop header
LB: loop body
LE: loop exit
PB: predicated region body
PF: predicated region fallthrough
CT: control target
= control target key end

     0   :  { %6 = vsyncpa [#allocation3], 0  ;;  %s178_s0 = inlined_call_operand.hbm [shape: f32[4,3840], index: 0, kind: input, shape index: {}]   ;;  %s179_s1 = inlined_call_operand.hbm [shape: f32[4,768], index: 1, kind: output, shape index: {}]  }
   0x1   :  { %7 = vsyncpa [#allocation4], 0  ;;  %s159_s6 = smov [#allocation2]  }
   0x2   :  { %s14_s7 = sshll.u32 %s159_s6, 4  ;;  %s15_s7 = int_to_ptr.vmem [resolvable:$true] %s14_s7 }
   0x3   :  { %s123_s8 = scalar_lea.vmem %s15_s7, 1920  ;;  %p128_p1 = scmp.lt.s32.totalorder %s15_s7, %s15_s7 }
   0x4   :  { %p124_p0 = scmp.ne.s32.totalorder %s15_s7, %s123_s8  ;;  %p129_p2 = scmp.lt.s32.totalorder %s123_s8, %s123_s8 }
   0x6   :  { %p130_p3 = por %p129_p2, %p128_p1 }
   0x8   :  { %p131_p4 = pnand %p130_p3, %p124_p0 }
   0xa   :  { %134 = shalt.err (!%p131_p4)
}
   0xb   :  { %17 = dma.hbm_to_vmem [thread:$0]  %s178_s0, 1920, %s15_s7, [#allocation3]  }
   0xc   :  { %155 = dma.done.wait [#allocation3], 1920  }
   0xd   :  { %156 = vsyncadd [#allocation3], 4294965376  ;;  %v21_v0 = vld [vmem:[#allocation2] sm:$0xff]  ;;  %v22_v1 = vld [vmem:[#allocation2 + $0x8] sm:$0xff]  ;;  %vm63_vm0 = vcmask 1043456   ;;  %v84_v51 = vlaneseq  ;;  %s161_s0 = smov [#allocation5]  }
   0xe   :  { %v23_v2 = vld [vmem:[#allocation2 + $0x10] sm:$0xff]  ;;  %v24_v3 = vld [vmem:[#allocation2 + $0x18] sm:$0xff]  ;;  %v25_v4 = vld [vmem:[#allocation2 + $0x20] sm:$0xff]  ;;  %v160_v49 = vmov 839922192   ;;  %s101_s11 = sshll.u32 %s161_s0, 4  ;;  %s102_s11 = int_to_ptr.vmem [resolvable:$true] %s101_s11 }
   0xf   :  { %v26_v5 = vld [vmem:[#allocation2 + $0x28] sm:$0xff]  ;;  %v27_v6 = vadd.f32 %v24_v3, %v21_v0  ;;  %v28_v7 = vadd.f32 %v25_v4, %v22_v1  ;;  %v30_v9 = vld [vmem:[#allocation2 + $0x30] sm:$0xff]  ;;  %v31_v10 = vld [vmem:[#allocation2 + $0x38] sm:$0xff]  ;;  %v82_v50 = vunpack.c.l.s4 %v160_v49  ;;  %v85_v53 = vshrl.u32 %v84_v51, 7  ;;  %s135_s12 = scalar_lea.vmem %s102_s11, 384  ;;  %p140_p6 = scmp.lt.s32.totalorder %s102_s11, %s102_s11 }
  0x10   :  { %v29_v8 = vadd.f32 %v26_v5, %v23_v2  ;;  %v32_v11 = vld [vmem:[#allocation2 + $0x40] sm:$0xff]  ;;  %v36_v12 = vld [vmem:[#allocation2 + $0x48] sm:$0xff]  ;;  %v37_v13 = vld [vmem:[#allocation2 + $0x50] sm:$0xff]  ;;  %p136_p5 = scmp.ne.s32.totalorder %s102_s11, %s135_s12  ;;  %p141_p7 = scmp.lt.s32.totalorder %s135_s12, %s135_s12 }
  0x11   :  { %v38_v14 = vld [vmem:[#allocation2 + $0x58] sm:$0xff]  ;;  %v33_v15 = vadd.f32 %v30_v9, %v27_v6  ;;  %v34_v16 = vadd.f32 %v31_v10, %v28_v7  ;;  %v42_v18 = vld [vmem:[#allocation2 + $0x60] sm:$0xff]  ;;  %v43_v19 = vld [vmem:[#allocation2 + $0x68] sm:$0xff]  ;;  %v83_v52 = vunpack.c.0.s8 %v82_v50 }
  0x12   :  { %v35_v17 = vadd.f32 %v32_v11, %v29_v8  ;;  %v44_v20 = vld [vmem:[#allocation2 + $0x70] sm:$0xff]  ;;  %p142_p8 = por %p141_p7, %p140_p6 }
  0x13   :  { %v39_v21 = vadd.f32 %v36_v12, %v33_v15  ;;  %v40_v22 = vadd.f32 %v37_v13, %v34_v16  ;;  %v86_v54 = vsub.s32 %v83_v52, %v85_v53 }
  0x14   :  { %v41_v23 = vadd.f32 %v38_v14, %v35_v17  ;;  %p143_p9 = pnand %p142_p8, %p136_p5 }
  0x15   :  { %v45_v24 = vadd.f32 %v42_v18, %v39_v21  ;;  %v46_v25 = vadd.f32 %v43_v19, %v40_v22 }
  0x16   :  { %v47_v26 = vadd.f32 %v44_v20, %v41_v23 }
  0x17   :  { %v48_v27 = vmul.f32 0.2, %v45_v24  ;;  %v49_v28 = vmul.f32 0.2, %v46_v25 }
  0x18   :  { %v50_v29 = vmul.f32 0.2, %v47_v26 }
  0x19   :  { %v51_v30 = vmul.f32 %v48_v27, %v48_v27  ;;  %v52_v31 = vmul.f32 %v49_v28, %v49_v28 }
  0x1a   :  { %v53_v32 = vmul.f32 %v50_v29, %v50_v29 }
  0x1b   :  { %v57_v33 = vcombine.high %v51_v30, %v51_v30  ;;  %v58_v34 = vcombine.high %v52_v31, %v52_v31  ;;  %v64_v35 = vsel %vm63_vm0, %v51_v30, 0.0  ;;  %v67_v37 = vsel %vm63_vm0, %v52_v31, 0.0 }
  0x1c   :  { %v59_v39 = vcombine.high %v53_v32, %v53_v32  ;;  %v71_v42 = vsel %vm63_vm0, %v53_v32, 0.0 }
  0x1d   :  { %v65_v36 = vsel %vm63_vm0, %v57_v33, 0.0  ;;  %v69_v40 = vsel %vm63_vm0, %v58_v34, 0.0 }
  0x1e   :  { %v66_v38 = vadd.f32 %v65_v36, %v64_v35  ;;  %v73_v44 = vsel %vm63_vm0, %v59_v39, 0.0 }
  0x20   :  { %v68_v41 = vadd.f32 %v67_v37, %v66_v38 }
  0x22   :  { %v70_v43 = vadd.f32 %v69_v40, %v68_v41 }
  0x24   :  { %v72_v45 = vadd.f32 %v71_v42, %v70_v43 }
  0x26   :  { %v74_v46 = vadd.f32 %v73_v44, %v72_v45 }
  0x28   :  { %75 = vadd.xlane.f32.xlu0 %v74_v46 }
  0xb1   :  { %v76_v47 = vpop.xlane.xlu0 %75 }
  0xb2   :  { %v77_v48 = vmax.f32 %v76_v47, 1e-24 }
  0xb4   :  { %113 = vrsqrt.f32 %v77_v48 }
  0xc1   :  { %v114_v55 = vpop.eup %113 }
  0xc2   :  { %v79_v56 = vmul.f32 0.5, %v114_v55 }
  0xc4   :  { %v87_v57 = vrot.slane %v79_v56, %v86_v54 }
  0xc6   :  { %v89_v58 = vmul.f32 %v87_v57, %v48_v27  ;;  %v90_v59 = vmul.f32 %v87_v57, %v49_v28  ;;  %v91_v60 = vmul.f32 %v87_v57, %v50_v29 }
  0xc8   :  { %92 = vst [vmem:[#allocation5] sm:$0xff] %v89_v58  ;;  %93 = vst [vmem:[#allocation5 + $0x8] sm:$0xff] %v90_v59 }
  0xc9   :  { %94 = vst [vmem:[#allocation5 + $0x10] sm:$0xff] %v91_v60 }
  0xca   :  { %146 = shalt.err (!%p143_p9)
}
  0xcb   :  { %104 = dma.vmem_to_hbm [thread:$0]  %s102_s11, 384, %s179_s1, [#allocation4]  }
  0xcc   :  { %157 = dma.done.wait [#allocation4], 384  }
  0xcd   :  { %158 = vsyncadd [#allocation4], 4294966912 }
  0xce   :  { %108 = vsyncpa [#allocation3], 1 }
  0xcf   :  { %109 = vsyncpa [#allocation4], 1 }

</bundles_post_ra>
